<compile_context>
chip_gen: v5e
topology: v5e:2x2
jax: 0.10.0
libtpu: 0.0.40
codegen_flags: <defaults>
</compile_context>

<pallas_src>
import functools

import jax
import jax.numpy as jnp
from jax.experimental import pallas as pl
from jax.experimental.pallas import tpu as pltpu

_LANE = 128


def _round_up(x, m):
    return (x + m - 1) // m * m


def _vmem_capacity_bytes():
    try:
        return int(pltpu.get_tpu_info().vmem_capacity_bytes)
    except Exception:
        return 64 * 1024 * 1024  # conservative (v7x per-core) fallback


def _vmem_limit(nbytes, cap):
    # Up to 3/4 of physical VMEM (96 MiB on v5e/v6e, 48 MiB on v7x).
    return int(min(max(nbytes, 32 * 1024 * 1024), (cap * 3) // 4))


def _sublane_granule(dtype):
    # f32 -> 8 rows, bf16 -> 16, int8/fp8 -> 32 (sublane packing granularity).
    return max(8, 32 // jnp.dtype(dtype).itemsize)


def _pick_batch_tile(batch, feat, dtype, cap):
    itm = jnp.dtype(dtype).itemsize
    gran = _sublane_granule(dtype)
    # Per-buffer budget ~1/8 of VMEM, clamped to [4, 16] MiB. Row cap 2048 on
    # 128 MiB parts (v5e/v6e), 1024 on v7x (64 MiB).
    budget = min(max(cap // 8, 4 << 20), 16 << 20)
    row_cap = 2048 if cap > (96 << 20) else 1024
    tb = budget // max(feat * itm, 1)
    tb = max(gran, min(row_cap, (tb // gran) * gran))
    if batch <= tb:
        return int(batch)
    return int(tb)


def _pick_label_tile(feat, labels_padded, wdtype, cap):
    itm = jnp.dtype(wdtype).itemsize
    budget = min(max(cap // 8, 4 << 20), 16 << 20)
    tl = budget // max(feat * itm, 1)
    tl = max(_LANE, (tl // _LANE) * _LANE)
    return int(min(labels_padded, tl))


# -----------------------------------------------------------------------------
# BatchNorm1d full-batch statistics (tiled reduction over the batch axis).
# Outputs mean (1, D) and scale = rsqrt(var + eps) (1, D), both f32.
# NOTE: uses the one-pass sum/sumsq formulation; acceptable for feature-scaled
# probe inputs, slight cancellation risk for |mean| >> std (documented).
# -----------------------------------------------------------------------------
def _bn_stats_kernel(x_ref, mean_ref, scale_ref, *, batch, tb, eps, need_mask):
    i = pl.program_id(0)

    @pl.when(i == 0)
    def _():
        mean_ref[...] = jnp.zeros_like(mean_ref)
        scale_ref[...] = jnp.zeros_like(scale_ref)

    xf = x_ref[...].astype(jnp.float32)
    if need_mask:  # only compiled in when B % tb != 0 (partial last tile)
        row = jax.lax.broadcasted_iota(jnp.int32, xf.shape, 0) + i * tb
        xf = jnp.where(row < batch, xf, 0.0)

    # Column sums on the MXU (ones-vector matmul) instead of XLU cross-sublane reduces.
    ones = jnp.ones((1, tb), jnp.float32)
    mean_ref[...] += jnp.dot(ones, xf, preferred_element_type=jnp.float32)
    scale_ref[...] += jnp.dot(ones, xf * xf, preferred_element_type=jnp.float32)

    @pl.when(i == pl.num_programs(0) - 1)
    def _():
        m = mean_ref[...] / batch
        var = jnp.maximum(scale_ref[...] / batch - m * m, 0.0)  # biased variance
        mean_ref[...] = m
        scale_ref[...] = jax.lax.rsqrt(var + eps)


def _batch_stats(x, tb, eps, cap):
    B, D = x.shape
    itm = jnp.dtype(x.dtype).itemsize
    need = 2 * tb * D * itm + 4 * D * 4 + (2 << 20)
    kern = functools.partial(_bn_stats_kernel, batch=B, tb=tb, eps=eps,
                             need_mask=(B % tb != 0))
    return pl.pallas_call(
        kern,
        out_shape=(jax.ShapeDtypeStruct((1, D), jnp.float32),
                   jax.ShapeDtypeStruct((1, D), jnp.float32)),
        grid_spec=pltpu.PrefetchScalarGridSpec(
            num_scalar_prefetch=0,
            grid=(pl.cdiv(B, tb),),
            in_specs=[pl.BlockSpec((tb, D), lambda i: (i, 0))],
            out_specs=[pl.BlockSpec((1, D), lambda i: (0, 0)),
                       pl.BlockSpec((1, D), lambda i: (0, 0))],
        ),
        compiler_params=pltpu.CompilerParams(
            dimension_semantics=("arbitrary",),
            vmem_limit_bytes=_vmem_limit(need, cap)),
        cost_estimate=pl.CostEstimate(
            flops=4 * B * D, transcendentals=0,
            bytes_accessed=B * D * itm + 2 * D * 4),
    )(x)


# -----------------------------------------------------------------------------
# Tiled matmul pass (with optional per-tile BN normalize folded in).
# -----------------------------------------------------------------------------
def _linear_kernel(x_ref, w_ref, b_ref, o_ref):
    y = jnp.dot(x_ref[...], w_ref[...], preferred_element_type=jnp.float32)
    o_ref[...] = (y + b_ref[...]).astype(o_ref.dtype)


def _bn_linear_kernel(x_ref, mean_ref, scale_ref, w_ref, b_ref, o_ref):
    # Normalize in f32 (matches reference numerics), then cast to the MXU operand
    # dtype; the per-element VPU work is hidden under the x DMA (pass is HBM-bound).
    xn = (x_ref[...].astype(jnp.float32) - mean_ref[...]) * scale_ref[...]
    y = jnp.dot(xn.astype(w_ref.dtype), w_ref[...], preferred_element_type=jnp.float32)
    o_ref[...] = (y + b_ref[...]).astype(o_ref.dtype)


def _tiled_forward(x, w, b, tb, cap, stats=None):
    B, D = x.shape
    Lp = w.shape[1]
    x_itm = jnp.dtype(x.dtype).itemsize
    w_itm = jnp.dtype(w.dtype).itemsize
    tl = _pick_label_tile(D, Lp, w.dtype, cap)
    nb, nl = pl.cdiv(B, tb), pl.cdiv(Lp, tl)

    x_spec = pl.BlockSpec((tb, D), lambda i, j: (i, 0))
    w_spec = pl.BlockSpec((D, tl), lambda i, j: (0, j))
    b_spec = pl.BlockSpec((1, tl), lambda i, j: (0, j))
    o_spec = pl.BlockSpec((tb, tl), lambda i, j: (i, j))

    need = (2 * tb * D * x_itm + 2 * tb * tl * x_itm
            + 2 * D * tl * w_itm + 2 * tl * 4 + 4 * D * 4 + (2 << 20))
    w_streams = 1 if nl == 1 else nb
    cost = pl.CostEstimate(
        flops=2 * B * D * Lp, transcendentals=0,
        bytes_accessed=B * D * x_itm + w_streams * D * Lp * w_itm
                       + Lp * 4 + B * Lp * x_itm)

    if stats is None:
        kernel = _linear_kernel
        operands = (x, w, b)
        in_specs = [x_spec, w_spec, b_spec]
    else:
        mean, scale = stats
        kernel = _bn_linear_kernel
        operands = (x, mean, scale, w, b)
        stat_spec = pl.BlockSpec((1, D), lambda i, j: (0, 0))
        in_specs = [x_spec, stat_spec, stat_spec, w_spec, b_spec]

    return pl.pallas_call(
        kernel,
        out_shape=jax.ShapeDtypeStruct((B, Lp), x.dtype),
        grid_spec=pltpu.PrefetchScalarGridSpec(
            num_scalar_prefetch=0,
            grid=(nb, nl),
            in_specs=in_specs,
            out_specs=o_spec,
        ),
        compiler_params=pltpu.CompilerParams(
            dimension_semantics=("parallel", "parallel"),
            vmem_limit_bytes=_vmem_limit(need, cap)),
        cost_estimate=cost,
    )(*operands)


# -----------------------------------------------------------------------------
# Fused BN + matmul (x resident in VMEM): x read from HBM exactly once,
# centered f32 variance (no sum-of-squares cancellation).
# -----------------------------------------------------------------------------
def _fused_bn_linear_kernel(x_ref, w_ref, b_ref, o_ref, *, eps):
    xf = x_ref[...].astype(jnp.float32)
    n = xf.shape[0]
    mean = jnp.sum(xf, axis=0, keepdims=True) * (1.0 / n)
    xc = xf - mean
    var = jnp.sum(xc * xc, axis=0, keepdims=True) * (1.0 / n)   # biased variance
    xn = xc * jax.lax.rsqrt(var + eps)
    y = jnp.dot(xn.astype(w_ref.dtype), w_ref[...], preferred_element_type=jnp.float32)
    o_ref[...] = (y + b_ref[...]).astype(o_ref.dtype)


def _fused_bn_forward(x, w, b, eps, cap):
    B, D = x.shape
    Lp = w.shape[1]
    x_itm = jnp.dtype(x.dtype).itemsize
    w_itm = jnp.dtype(w.dtype).itemsize
    need = B * D * (x_itm + 8) + D * Lp * w_itm + B * Lp * (x_itm + 4) + (4 << 20)
    kern = functools.partial(_fused_bn_linear_kernel, eps=eps)
    return pl.pallas_call(
        kern,
        out_shape=jax.ShapeDtypeStruct((B, Lp), x.dtype),
        in_specs=[pl.BlockSpec(memory_space=pltpu.MemorySpace.VMEM)] * 3,
        out_specs=pl.BlockSpec(memory_space=pltpu.MemorySpace.VMEM),
        compiler_params=pltpu.CompilerParams(vmem_limit_bytes=_vmem_limit(need, cap)),
        cost_estimate=pl.CostEstimate(
            flops=2 * B * D * Lp, transcendentals=0,
            bytes_accessed=B * D * x_itm + D * Lp * w_itm + Lp * 4 + B * Lp * x_itm),
    )(x, w, b)


# -----------------------------------------------------------------------------
# Public API
# -----------------------------------------------------------------------------
def prepare_linear_classifier_params(weight, bias):
    """One-time prep: nn.Linear weight (L, D) -> (D, Lp) MXU layout with the label dim
    padded to a multiple of 128 (lane-dense, unmasked output stores). Bias -> (1, Lp) f32."""
    L, D = weight.shape
    Lp = _round_up(L, _LANE)
    w_t = jnp.pad(weight.T, ((0, 0), (0, Lp - L)))
    b_p = jnp.pad(bias.reshape(1, L).astype(jnp.float32), ((0, 0), (0, Lp - L)))
    return w_t, b_p


def linear_classifier_forward(x, w_t, b_p, num_labels, *, apply_bn=False, eps=1e-6,
                              force_path=None, tb_override=None):
    """x: (B, D). w_t: (D, Lp) pre-transposed/padded weight. b_p: (1, Lp) f32 bias.
    force_path/tb_override are test hooks ("fused"/"tiled", int tile)."""
    B, D = x.shape
    Lp = w_t.shape[1]
    cap = _vmem_capacity_bytes()
    x_itm = jnp.dtype(x.dtype).itemsize

    # Cast the weight to the activation dtype ONCE, outside the kernel hot loop
    # (bf16 activations -> bf16 MXU operands with f32 accumulation).
    w = w_t.astype(x.dtype)
    b = b_p.astype(jnp.float32)

    tb = int(tb_override) if tb_override is not None else _pick_batch_tile(B, D, x.dtype, cap)

    if apply_bn:
        w_itm = jnp.dtype(w.dtype).itemsize
        fused_need = B * D * (x_itm + 8) + D * Lp * w_itm + B * Lp * (x_itm + 4) + (4 << 20)
        use_fused = (fused_need <= cap // 2) if force_path is None else (force_path == "fused")
        if use_fused:
            out = _fused_bn_forward(x, w, b, eps, cap)
        else:
            # Large B*D: tiled two-pass (stats reduction, then normalize+matmul).
            # No f32 folded weight is ever materialized in HBM.
            mean, scale = _batch_stats(x, tb, eps, cap)
            out = _tiled_forward(x, w, b, tb, cap, stats=(mean, scale))
    else:
        out = _tiled_forward(x, w, b, tb, cap)

    # TODO(synk): consumers that can read lane-padded logits could take `out` directly
    # and skip this (B, Lp) -> (B, num_labels) slice.
    return out[:, :num_labels]


# -----------------------------------------------------------------------------
# Reference + demo
# -----------------------------------------------------------------------------
def _reference(x, weight, bias, *, apply_bn, eps=1e-6):
    x = x.astype(jnp.float32)
    if apply_bn:
        mean = jnp.mean(x, axis=0, keepdims=True)
        var = jnp.mean((x - mean) ** 2, axis=0, keepdims=True)   # biased variance
        x = (x - mean) / jnp.sqrt(var + eps)
    return x @ weight.T.astype(jnp.float32) + bias.astype(jnp.float32)


if __name__ == "__main__":
    key = jax.random.PRNGKey(0)
    input_dim, num_labels = 32, 10
    kx, kw, kb, kx2 = jax.random.split(key, 4)

    # Deterministic nn.Linear-style init: U(-1/sqrt(D), 1/sqrt(D))
    bound = 1.0 / (input_dim ** 0.5)
    weight = jax.random.uniform(kw, (num_labels, input_dim),
                                minval=-bound, maxval=bound, dtype=jnp.float32)
    bias = jax.random.uniform(kb, (num_labels,),
                              minval=-bound, maxval=bound, dtype=jnp.float32)

    # Parameter prep happens ONCE (transpose + lane padding), not per forward call.
    w_t, b_p = prepare_linear_classifier_params(weight, bias)

    fwd = jax.jit(linear_classifier_forward,
                  static_argnames=("num_labels", "apply_bn", "eps",
                                   "force_path", "tb_override"))

    ok = True

    # Small batch: fused BN path (x resident) and single-tile matmul.
    x_small = jax.random.normal(kx, (8, input_dim), dtype=jnp.float32)
    for apply_bn in (False, True):
        out = jax.block_until_ready(
            fwd(x_small, w_t, b_p, num_labels=num_labels, apply_bn=apply_bn))
        ref = _reference(x_small, weight, bias, apply_bn=apply_bn)
        ok &= (out.shape == ref.shape) and bool(jnp.allclose(out, ref, atol=1e-4, rtol=1e-4))

    # Larger batch with a forced small tile: exercises the tiled stats reduction,
    # the tiled normalize+matmul path, multi-step accumulation and the partial
    # last-tile mask (40 % 16 != 0).
    x_big = jax.random.normal(kx2, (40, input_dim), dtype=jnp.float32)
    for apply_bn in (False, True):
        out = jax.block_until_ready(
            fwd(x_big, w_t, b_p, num_labels=num_labels, apply_bn=apply_bn,
                force_path="tiled", tb_override=16))
        ref = _reference(x_big, weight, bias, apply_bn=apply_bn)
        ok &= (out.shape == ref.shape) and bool(jnp.allclose(out, ref, atol=1e-4, rtol=1e-4))

    if ok:
        print("KERNEL_OK")
</pallas_src>

<mosaic_0001>
module attributes {stable_mosaic.version = 11 : i64} {
  func.func @_linear_kernel(%arg0: i32, %arg1: i32, %arg2: memref<8x32xf32, #tpu.memory_space<vmem>>, %arg3: memref<32x128xf32, #tpu.memory_space<vmem>>, %arg4: memref<1x128xf32, #tpu.memory_space<vmem>>, %arg5: memref<8x128xf32, #tpu.memory_space<vmem>>) attributes {dimension_semantics = [#tpu.dimension_semantics<parallel>, #tpu.dimension_semantics<parallel>], iteration_bounds = array<i64: 1, 1>, scalar_prefetch = 0 : i64, scratch_operands = 0 : i64, tpu.core_type = #tpu.core_type<tc>, window_params = [{transform_indices = @transform_0, window_bounds = array<i64: 8, 32>}, {transform_indices = @transform_1, window_bounds = array<i64: 32, 128>}, {transform_indices = @transform_2, window_bounds = array<i64: 1, 128>}, {transform_indices = @transform_3, window_bounds = array<i64: 8, 128>}]} {
    %c0 = arith.constant 0 : index
    %c0_0 = arith.constant 0 : index
    %0 = vector.load %arg2[%c0, %c0_0] : memref<8x32xf32, #tpu.memory_space<vmem>>, vector<8x32xf32>
    %c0_1 = arith.constant 0 : index
    %c0_2 = arith.constant 0 : index
    %1 = vector.load %arg3[%c0_1, %c0_2] : memref<32x128xf32, #tpu.memory_space<vmem>>, vector<32x128xf32>
    %cst = arith.constant dense<0.000000e+00> : vector<8x128xf32>
    %2 = tpu.matmul %0, %1, %cst {dimension_numbers = #tpu.dot_dimension_numbers<[1], [0], [0], [1], [0, 0, 1, 1], [], []>} : vector<8x32xf32>, vector<32x128xf32>, vector<8x128xf32> -> vector<8x128xf32>
    %c0_3 = arith.constant 0 : index
    %c0_4 = arith.constant 0 : index
    %3 = vector.load %arg4[%c0_3, %c0_4] : memref<1x128xf32, #tpu.memory_space<vmem>>, vector<1x128xf32>
    %4 = vector.broadcast %3 : vector<1x128xf32> to vector<8x128xf32>
    %5 = arith.addf %2, %4 : vector<8x128xf32>
    %c0_5 = arith.constant 0 : index
    %c0_6 = arith.constant 0 : index
    %6 = vector.load %arg5[%c0_5, %c0_6] : memref<8x128xf32, #tpu.memory_space<vmem>>, vector<8x128xf32>
    tpu.vector_store %arg5[%c0_5, %c0_6], %5 {strides = array<i32>} : memref<8x128xf32, #tpu.memory_space<vmem>>, vector<8x128xf32>,
    return
  }
  func.func @transform_0(%arg0: i32, %arg1: i32) -> (i32, i32) {
    %c0_i32 = arith.constant 0 : i32
    %c0_i32_0 = arith.constant 0 : i32
    return %arg0, %c0_i32 : i32, i32
  }
  func.func @transform_1(%arg0: i32, %arg1: i32) -> (i32, i32) {
    %c0_i32 = arith.constant 0 : i32
    %c0_i32_0 = arith.constant 0 : i32
    return %c0_i32, %arg1 : i32, i32
  }
  func.func @transform_2(%arg0: i32, %arg1: i32) -> (i32, i32) {
    %c0_i32 = arith.constant 0 : i32
    %c0_i32_0 = arith.constant 0 : i32
    return %c0_i32, %arg1 : i32, i32
  }
  func.func @transform_3(%arg0: i32, %arg1: i32) -> (i32, i32) {
    %c0_i32 = arith.constant 0 : i32
    return %arg0, %arg1 : i32, i32
  }
}

</mosaic_0001>

<bundles_post_ra>
// kernel: linear_classifier_forward.1
= control target key start
LH: loop header
LB: loop body
LE: loop exit
PB: predicated region body
PF: predicated region fallthrough
CT: control target
= control target key end

     0   :  { %8 = vsyncpa [#allocation3], 0  ;;  %s219_s0 = inlined_call_operand.hbm [shape: f32[8,32], index: 0, kind: input, shape index: {}]   ;;  %s220_s1 = inlined_call_operand.hbm [shape: f32[32,128], index: 1, kind: input, shape index: {}]   ;;  %s221_s2 = inlined_call_operand.vmem [shape: f32[1,128], index: 2, kind: input, shape index: {}]   ;;  %s222_s3 = inlined_call_operand.hbm [shape: f32[8,128], index: 3, kind: output, shape index: {}]  }
   0x1   :  { %9 = vsyncpa [#allocation6], 0 }
   0x2   :  { %10 = vsyncpa [#allocation4], 0  ;;  %s16_s14 = sshll.u32 %s219_s0, 4  ;;  %s182_s15 = smov [#allocation2]   ;;  %s17_s14 = int_to_ptr.hbm [resolvable:$true] %s16_s14 }
   0x3   :  { %s18_s16 = sshll.u32 %s182_s15, 4  ;;  %s26_s19 = sshll.u32 %s220_s1, 4  ;;  %s19_s16 = int_to_ptr.vmem [resolvable:$true] %s18_s16  ;;  %s27_s19 = int_to_ptr.hbm [resolvable:$true] %s26_s19 }
   0x4   :  { %21 = dma.hbm_to_vmem [thread:$0]  %s17_s14, 128, %s19_s16, [#allocation3]  }
   0x5   :  { %s183_s20 = smov [#allocation5]   ;;  %s184_s22 = smov 128  }
   0x6   :  { %s28_s21 = sshll.u32 %s183_s20, 4  ;;  %s185_s23 = smov 8   ;;  %s29_s21 = int_to_ptr.vmem [resolvable:$true] %s28_s21 }
   0x7   :  { %34 = dma.hbm_to_vmem [thread:$0]  %s27_s19, 512, %s29_s21, [#allocation6], %s184_s22, %s184_s22, %s185_s23  }
   0x8   :  { %176 = dma.done.wait [#allocation3], 128  }
   0x9   :  { %177 = vsyncadd [#allocation3], 4294967168 }
   0xa   :  { %178 = dma.done.wait [#allocation6], 512  }
   0xb   :  { %179 = vsyncadd [#allocation6], 4294966784  ;;  %v49_v0 = vld [vmem:[#allocation5 + $0x18] sm:$0xff]  ;;  %v48_v1 = vld [vmem:[#allocation5 + $0x10] sm:$0xff]  ;;  %vm54_vm0 = vcmask 261120   ;;  %s186_s24 = smov [#allocation7]  }
   0xc   :  { %70 = vmatpush.msra.mxu0 %v49_v0  ;;  %v47_v2 = vld [vmem:[#allocation5 + $0x8] sm:$0xff]  ;;  %v46_v3 = vld [vmem:[#allocation5] sm:$0xff]  ;;  %v45_v4 = vld [vmem:[#allocation2] sm:$0xff]  ;;  %s84_s25 = sshll.u32 %s186_s24, 4  ;;  %s86_s28 = sshll.u32 %s222_s3, 4  ;;  %s85_s25 = int_to_ptr.vmem [resolvable:$true] %s84_s25  ;;  %s87_s28 = int_to_ptr.hbm [resolvable:$true] %s86_s28 }
   0xd   :  { %v103_v5 = vld [vmem:[%s221_s2] ss:$0 sm:$0xff] }
   0xe   :  { %71 = vmatpush.msra.mxu0 %v48_v1 }
  0x10   :  { %72 = vmatpush.msra.mxu0 %v47_v2 }
  0x12   :  { %73 = vmatpush.msra.mxu0 %v46_v3 }
  0x13   :  { %97 = vmatmul.msk.f32.vlgmr.msra.gmra.mxu0 %vm54_vm0, %v45_v4 }
  0x90   :  { %v75_v6 = vpop.f32.mrf.mxu0 }
  0x91   :  { %v76_v7 = vadd.f32 %v103_v5, %v75_v6 }
  0x93   :  { %78 = vst [vmem:[#allocation7] sm:$0xff] %v76_v7 }
  0x94   :  { %89 = dma.vmem_to_hbm [thread:$0]  %s85_s25, 128, %s87_s28, [#allocation4]  }
  0x95   :  { %180 = dma.done.wait [#allocation4], 128  }
  0x96   :  { %181 = vsyncadd [#allocation4], 4294967168 }
  0x97   :  { %94 = vsyncpa [#allocation3], 1 }
  0x98   :  { %95 = vsyncpa [#allocation6], 1 }
  0x99   :  { %96 = vsyncpa [#allocation4], 1 }

</bundles_post_ra>
